<compile_context>
chip_gen: v7x
topology: tpu7x:2x2x1
jax: 0.10.0
libtpu: 0.0.40
codegen_flags: <defaults>
</compile_context>

<pallas_src>
import functools

import jax
import jax.numpy as jnp
from jax.experimental import pallas as pl
from jax.experimental.pallas import tpu as pltpu


def _round_up(x: int, m: int) -> int:
    return (x + m - 1) // m * m


def _lse_kernel(x_ref, o_ref, m_ref, l_ref, *, tile_c, num_classes):
    """Online row-logsumexp; class axis is grid axis 1 (the reduction axis)."""
    k = pl.program_id(1)
    last = pl.num_programs(1) - 1

    @pl.when(k == 0)
    def _init():
        m_ref[...] = jnp.full(m_ref.shape, -jnp.inf, dtype=jnp.float32)
        l_ref[...] = jnp.zeros(l_ref.shape, dtype=jnp.float32)

    x = x_ref[...].astype(jnp.float32)  # upcast once; all softmax math in f32

    def update(xv):
        m_prev = m_ref[...]
        m_new = jnp.maximum(m_prev, jnp.max(xv, axis=-1, keepdims=True))
        l_ref[...] = jnp.exp(m_prev - m_new) * l_ref[...] + jnp.sum(
            jnp.exp(xv - m_new), axis=-1, keepdims=True
        )
        m_ref[...] = m_new

    if num_classes % tile_c != 0:
        # Ragged last class tile: mask out-of-bounds lanes with a large negative
        # (NOT -inf -> avoids inf-inf NaN in the rescale).  The select runs only on
        # the final class step; every other step takes the unmasked path.
        @pl.when(k != last)
        def _full_tile():
            update(x)

        @pl.when(k == last)
        def _ragged_tile():
            col = jax.lax.broadcasted_iota(jnp.int32, x.shape, 1)
            rem = num_classes - k * tile_c  # number of valid lanes in this tile
            update(jnp.where(col < rem, x, -1e30))
    else:
        update(x)

    @pl.when(k == last)
    def _finalize():
        o_ref[...] = (m_ref[...] + jnp.log(l_ref[...])).astype(o_ref.dtype)


def _row_logsumexp(x, *, tile_n=None, tile_c=None):
    """logsumexp over axis -1 of an (N, C) array via a streaming Pallas kernel."""
    N, C = x.shape
    itemsize = jnp.dtype(x.dtype).itemsize
    sub_min = 8 * max(1, 4 // itemsize)  # min sublane tile: f32 8, bf16 16, 8-bit 32

    # Row tile (sublane axis).
    tn = tile_n if tile_n is not None else 256
    tn = _round_up(min(max(tn, sub_min), _round_up(N, sub_min)), sub_min)
    if tile_n is None and N >= 2 * sub_min and pl.cdiv(N, tn) < 2:
        # Keep >= 2 row tiles so the "parallel" axis can shard across v7x's 2 TCs.
        tn = _round_up((N + 1) // 2, sub_min)

    # Class tile (lane axis): target ~4 MiB per logits buffer.
    if tile_c is not None:
        tc = _round_up(max(tile_c, 128), 128)
    else:
        tc = max(128, ((4 << 20) // (tn * itemsize)) // 128 * 128)
    tc = min(tc, _round_up(C, 128))

    grid = (pl.cdiv(N, tn), pl.cdiv(C, tc))

    out = pl.pallas_call(
        functools.partial(_lse_kernel, tile_c=tc, num_classes=C),
        out_shape=jax.ShapeDtypeStruct((N, 1), jnp.float32),
        grid_spec=pltpu.PrefetchScalarGridSpec(
            num_scalar_prefetch=0,
            grid=grid,
            in_specs=[pl.BlockSpec((tn, tc), lambda i, k: (i, k))],
            # loss block is revisited across the class axis; written only at last k
            out_specs=pl.BlockSpec((tn, 1), lambda i, k: (i, 0)),
            scratch_shapes=[
                pltpu.VMEM((tn, 1), jnp.float32),  # running max m
                pltpu.VMEM((tn, 1), jnp.float32),  # running sum-exp l
            ],
        ),
        compiler_params=pltpu.CompilerParams(
            dimension_semantics=("parallel", "arbitrary"),
        ),
    )(x)
    return out[:, 0]


def dyn_cross_entropy(state_output, y, *, on_simplex=False, tile_n=None, tile_c=None):
    """Per-sample loss matching DynCrossEntropy.forward (reduction='none')."""
    N, C = state_output.shape
    y = y.astype(jnp.int32)

    # TODO(synk): PyTorch ignore_index (-100) semantics are not reproduced; labels are
    # assumed to lie in [0, C).
    # Target value x[i, y[i]]: an N-element gather in the original dtype (cheap, and it
    # keeps the compare/select work off the per-element kernel stream).
    tgt = jnp.take_along_axis(state_output, y[:, None], axis=1)[:, 0].astype(jnp.float32)

    if on_simplex:
        # (perf review) The simplex path only needs the N gathered targets; streaming
        # the full (N, C) array through a kernel would be ~C x more HBM traffic.
        loss = -jnp.log(jnp.maximum(tgt, 1e-12))
    else:
        lse = _row_logsumexp(state_output, tile_n=tile_n, tile_c=tile_c)
        loss = lse - tgt

    return loss.astype(state_output.dtype)


def _reference(x, y, on_simplex):
    x32 = x.astype(jnp.float32)
    tgt = jnp.take_along_axis(x32, y[:, None].astype(jnp.int32), axis=1)[:, 0]
    if on_simplex:
        return -jnp.log(jnp.maximum(tgt, 1e-12))
    lse = jax.scipy.special.logsumexp(x32, axis=-1)
    return lse - tgt


if __name__ == "__main__":
    key = jax.random.PRNGKey(0)
    kx, ky, kp = jax.random.split(key, 3)

    # Small demo shapes; tiles chosen to exercise a multi-tile class reduction,
    # a ragged last class tile (200 % 128 != 0) and a ragged last row tile.
    N, C = 50, 200

    logits = jax.random.normal(kx, (N, C), dtype=jnp.float32)
    labels = jax.random.randint(ky, (N,), 0, C, dtype=jnp.int32)

    # --- cross-entropy path (on_simplex=False): raw logits, f32 ---
    loss_ce = dyn_cross_entropy(logits, labels, on_simplex=False, tile_n=16, tile_c=128)
    loss_ce = jax.block_until_ready(loss_ce)
    ref_ce = _reference(logits, labels, False)
    assert loss_ce.shape == (N,)
    assert jnp.allclose(loss_ce, ref_ce, rtol=1e-4, atol=1e-4), float(
        jnp.max(jnp.abs(loss_ce - ref_ce))
    )

    # --- cross-entropy path with bf16 logits (dtype-aware tiling, default tiles) ---
    logits_bf16 = logits.astype(jnp.bfloat16)
    loss_bf16 = dyn_cross_entropy(logits_bf16, labels, on_simplex=False)
    loss_bf16 = jax.block_until_ready(loss_bf16)
    ref_bf16 = _reference(logits_bf16, labels, False)
    assert jnp.allclose(
        loss_bf16.astype(jnp.float32), ref_bf16, rtol=2e-2, atol=2e-2
    ), float(jnp.max(jnp.abs(loss_bf16.astype(jnp.float32) - ref_bf16)))

    # --- simplex path (on_simplex=True): probabilities ---
    probs = jax.nn.softmax(jax.random.normal(kp, (N, C), dtype=jnp.float32), axis=-1)
    loss_nll = dyn_cross_entropy(probs, labels, on_simplex=True)
    loss_nll = jax.block_until_ready(loss_nll)
    ref_nll = _reference(probs, labels, True)
    assert jnp.allclose(loss_nll, ref_nll, rtol=1e-4, atol=1e-4), float(
        jnp.max(jnp.abs(loss_nll - ref_nll))
    )

    print("KERNEL_OK")
</pallas_src>

<mosaic_0001>
module attributes {stable_mosaic.version = 11 : i64} {
  func.func @_lse_kernel(%arg0: i32, %arg1: i32, %arg2: memref<16x128xf32, #tpu.memory_space<vmem>>, %arg3: memref<16x1xf32, #tpu.memory_space<vmem>>, %arg4: memref<16x1xf32, #tpu.memory_space<vmem>>, %arg5: memref<16x1xf32, #tpu.memory_space<vmem>>) attributes {dimension_semantics = [#tpu.dimension_semantics<parallel>, #tpu.dimension_semantics<arbitrary>], iteration_bounds = array<i64: 4, 2>, scalar_prefetch = 0 : i64, scratch_operands = 2 : i64, tpu.core_type = #tpu.core_type<tc>, window_params = [{transform_indices = @transform_0, window_bounds = array<i64: 16, 128>}, {transform_indices = @transform_1, window_bounds = array<i64: 16, 1>}]} {
    %c0_i32 = arith.constant 0 : i32
    %0 = arith.cmpi eq, %arg1, %c0_i32 : i32
    %1 = arith.extui %0 : i1 to i32
    %c0_i32_0 = arith.constant 0 : i32
    %2 = arith.cmpi ne, %1, %c0_i32_0 : i32
    scf.if %2 {
      %cst = arith.constant 0xFF800000 : f32
      %13 = vector.broadcast %cst : f32 to vector<16x1xf32>
      %c0_7 = arith.constant 0 : index
      %c0_8 = arith.constant 0 : index
      %14 = vector.load %arg4[%c0_7, %c0_8] : memref<16x1xf32, #tpu.memory_space<vmem>>, vector<16x1xf32>
      tpu.vector_store %arg4[%c0_7, %c0_8], %13 {strides = array<i32>} : memref<16x1xf32, #tpu.memory_space<vmem>>, vector<16x1xf32>,
      %cst_9 = arith.constant 0.000000e+00 : f32
      %15 = vector.broadcast %cst_9 : f32 to vector<16x1xf32>
      %c0_10 = arith.constant 0 : index
      %c0_11 = arith.constant 0 : index
      %16 = vector.load %arg5[%c0_10, %c0_11] : memref<16x1xf32, #tpu.memory_space<vmem>>, vector<16x1xf32>
      tpu.vector_store %arg5[%c0_10, %c0_11], %15 {strides = array<i32>} : memref<16x1xf32, #tpu.memory_space<vmem>>, vector<16x1xf32>,
    } else {
    }
    %c0 = arith.constant 0 : index
    %c0_1 = arith.constant 0 : index
    %3 = vector.load %arg2[%c0, %c0_1] : memref<16x128xf32, #tpu.memory_space<vmem>>, vector<16x128xf32>
    %c1_i32 = arith.constant 1 : i32
    %4 = arith.cmpi ne, %arg1, %c1_i32 : i32
    %5 = arith.extui %4 : i1 to i32
    %c0_i32_2 = arith.constant 0 : i32
    %6 = arith.cmpi ne, %5, %c0_i32_2 : i32
    scf.if %6 {
      %c0_7 = arith.constant 0 : index
      %c0_8 = arith.constant 0 : index
      %13 = vector.load %arg4[%c0_7, %c0_8] : memref<16x1xf32, #tpu.memory_space<vmem>>, vector<16x1xf32>
      %cst = arith.constant dense<0xFF800000> : vector<16xf32>
      %14 = vector.multi_reduction <maximumf>, %3, %cst [1] : vector<16x128xf32> to vector<16xf32>
      %15 = vector.shape_cast %14 : vector<16xf32> to vector<16x1xf32>
      %16 = arith.maximumf %13, %15 : vector<16x1xf32>
      %17 = arith.subf %13, %16 : vector<16x1xf32>
      %18 = math.exp %17 : vector<16x1xf32>
      %c0_9 = arith.constant 0 : index
      %c0_10 = arith.constant 0 : index
      %19 = vector.load %arg5[%c0_9, %c0_10] : memref<16x1xf32, #tpu.memory_space<vmem>>, vector<16x1xf32>
      %20 = arith.mulf %18, %19 : vector<16x1xf32>
      %21 = vector.broadcast %16 : vector<16x1xf32> to vector<16x128xf32>
      %22 = arith.subf %3, %21 : vector<16x128xf32>
      %23 = math.exp %22 : vector<16x128xf32>
      %cst_11 = arith.constant dense<0.000000e+00> : vector<16xf32>
      %24 = vector.multi_reduction <add>, %23, %cst_11 [1] : vector<16x128xf32> to vector<16xf32>
      %25 = vector.shape_cast %24 : vector<16xf32> to vector<16x1xf32>
      %26 = arith.addf %20, %25 : vector<16x1xf32>
      %c0_12 = arith.constant 0 : index
      %c0_13 = arith.constant 0 : index
      %27 = vector.load %arg5[%c0_12, %c0_13] : memref<16x1xf32, #tpu.memory_space<vmem>>, vector<16x1xf32>
      tpu.vector_store %arg5[%c0_12, %c0_13], %26 {strides = array<i32>} : memref<16x1xf32, #tpu.memory_space<vmem>>, vector<16x1xf32>,
      %c0_14 = arith.constant 0 : index
      %c0_15 = arith.constant 0 : index
      %28 = vector.load %arg4[%c0_14, %c0_15] : memref<16x1xf32, #tpu.memory_space<vmem>>, vector<16x1xf32>
      tpu.vector_store %arg4[%c0_14, %c0_15], %16 {strides = array<i32>} : memref<16x1xf32, #tpu.memory_space<vmem>>, vector<16x1xf32>,
    } else {
    }
    %c1_i32_3 = arith.constant 1 : i32
    %7 = arith.cmpi eq, %arg1, %c1_i32_3 : i32
    %8 = arith.extui %7 : i1 to i32
    %c0_i32_4 = arith.constant 0 : i32
    %9 = arith.cmpi ne, %8, %c0_i32_4 : i32
    scf.if %9 {
      %13 = tpu.iota {dimensions = array<i32: 1>} : vector<16x128xi32>
      %c128_i32 = arith.constant 128 : i32
      %14 = arith.muli %arg1, %c128_i32 : i32
      %c200_i32 = arith.constant 200 : i32
      %15 = arith.subi %c200_i32, %14 : i32
      %16 = vector.broadcast %15 : i32 to vector<16x128xi32>
      %17 = arith.cmpi slt, %13, %16 : vector<16x128xi32>
      %cst = arith.constant -1.000000e+30 : f32
      %18 = vector.broadcast %cst : f32 to vector<16x128xf32>
      %19 = arith.select %17, %3, %18 : vector<16x128xi1>, vector<16x128xf32>
      %c0_7 = arith.constant 0 : index
      %c0_8 = arith.constant 0 : index
      %20 = vector.load %arg4[%c0_7, %c0_8] : memref<16x1xf32, #tpu.memory_space<vmem>>, vector<16x1xf32>
      %cst_9 = arith.constant dense<0xFF800000> : vector<16xf32>
      %21 = vector.multi_reduction <maximumf>, %19, %cst_9 [1] : vector<16x128xf32> to vector<16xf32>
      %22 = vector.shape_cast %21 : vector<16xf32> to vector<16x1xf32>
      %23 = arith.maximumf %20, %22 : vector<16x1xf32>
      %24 = arith.subf %20, %23 : vector<16x1xf32>
      %25 = math.exp %24 : vector<16x1xf32>
      %c0_10 = arith.constant 0 : index
      %c0_11 = arith.constant 0 : index
      %26 = vector.load %arg5[%c0_10, %c0_11] : memref<16x1xf32, #tpu.memory_space<vmem>>, vector<16x1xf32>
      %27 = arith.mulf %25, %26 : vector<16x1xf32>
      %28 = vector.broadcast %23 : vector<16x1xf32> to vector<16x128xf32>
      %29 = arith.subf %19, %28 : vector<16x128xf32>
      %30 = math.exp %29 : vector<16x128xf32>
      %cst_12 = arith.constant dense<0.000000e+00> : vector<16xf32>
      %31 = vector.multi_reduction <add>, %30, %cst_12 [1] : vector<16x128xf32> to vector<16xf32>
      %32 = vector.shape_cast %31 : vector<16xf32> to vector<16x1xf32>
      %33 = arith.addf %27, %32 : vector<16x1xf32>
      %c0_13 = arith.constant 0 : index
      %c0_14 = arith.constant 0 : index
      %34 = vector.load %arg5[%c0_13, %c0_14] : memref<16x1xf32, #tpu.memory_space<vmem>>, vector<16x1xf32>
      tpu.vector_store %arg5[%c0_13, %c0_14], %33 {strides = array<i32>} : memref<16x1xf32, #tpu.memory_space<vmem>>, vector<16x1xf32>,
      %c0_15 = arith.constant 0 : index
      %c0_16 = arith.constant 0 : index
      %35 = vector.load %arg4[%c0_15, %c0_16] : memref<16x1xf32, #tpu.memory_space<vmem>>, vector<16x1xf32>
      tpu.vector_store %arg4[%c0_15, %c0_16], %23 {strides = array<i32>} : memref<16x1xf32, #tpu.memory_space<vmem>>, vector<16x1xf32>,
    } else {
    }
    %c1_i32_5 = arith.constant 1 : i32
    %10 = arith.cmpi eq, %arg1, %c1_i32_5 : i32
    %11 = arith.extui %10 : i1 to i32
    %c0_i32_6 = arith.constant 0 : i32
    %12 = arith.cmpi ne, %11, %c0_i32_6 : i32
    scf.if %12 {
      %c0_7 = arith.constant 0 : index
      %c0_8 = arith.constant 0 : index
      %13 = vector.load %arg4[%c0_7, %c0_8] : memref<16x1xf32, #tpu.memory_space<vmem>>, vector<16x1xf32>
      %c0_9 = arith.constant 0 : index
      %c0_10 = arith.constant 0 : index
      %14 = vector.load %arg5[%c0_9, %c0_10] : memref<16x1xf32, #tpu.memory_space<vmem>>, vector<16x1xf32>
      %15 = math.log %14 : vector<16x1xf32>
      %16 = arith.addf %13, %15 : vector<16x1xf32>
      %c0_11 = arith.constant 0 : index
      %c0_12 = arith.constant 0 : index
      %17 = vector.load %arg3[%c0_11, %c0_12] : memref<16x1xf32, #tpu.memory_space<vmem>>, vector<16x1xf32>
      tpu.vector_store %arg3[%c0_11, %c0_12], %16 {strides = array<i32>} : memref<16x1xf32, #tpu.memory_space<vmem>>, vector<16x1xf32>,
    } else {
    }
    return
  }
  func.func @transform_0(%arg0: i32, %arg1: i32) -> (i32, i32) {
    %c0_i32 = arith.constant 0 : i32
    return %arg0, %arg1 : i32, i32
  }
  func.func @transform_1(%arg0: i32, %arg1: i32) -> (i32, i32) {
    %c0_i32 = arith.constant 0 : i32
    %c0_i32_0 = arith.constant 0 : i32
    return %arg0, %c0_i32 : i32, i32
  }
}

</mosaic_0001>

<bundles_post_ra>
// kernel: tpu_custom_call.1
= control target key start
LH: loop header
LB: loop body
LE: loop exit
PB: predicated region body
PF: predicated region fallthrough
CT: control target
= control target key end

     0   :  { %6 = vsyncpa [#allocation5], 0  ;;  %s1164_s0 = inlined_call_operand.hbm [shape: f32[50,200], index: 0, kind: input, shape index: {}]   ;;  %s1165_s1 = inlined_call_operand.vmem [shape: f32[50,1], index: 1, kind: output, shape index: {}]  }
   0x1   :  { %8 = vsyncpa [#allocation5 + $0x1], 0  ;;  %s945_s6 = smov 0   ;;  %s947_s7 = smov 0  }
   0x2   :  { %s949_s8 = smov 0   ;;  %s951_s9 = smov 0  }
   0x3   :  { %s953_s10 = smov 0   ;;  %s955_s11 = smov 0  }
   0x4   :  { %s957_s12 = smov 0   ;;  %s959_s13 = smov 0  }
   0x5   :  { %s961_s14 = smov 0   ;;  %s963_s15 = smov 0  }
   0x6 LB: > { %s535_s16 = sadd.s32 4294967295, %s893_s15   ;;  %s23_s17 = sadd.s32 1, %s885_s13  ;;  %s893_s15 = sphi %s963_s15, %s14_s15   ;;  %s889_s14 = sphi %s961_s14, %s1177_s14   ;;  %s885_s13 = sphi %s959_s13, %s1176_s13   ;;  %s881_s12 = sphi %s957_s12, %s1175_s12   ;;  %s877_s11 = sphi %s955_s11, %s1174_s11   ;;  %s873_s10 = sphi %s953_s10, %s1173_s10   ;;  %s869_s9 = sphi %s951_s9, %s1172_s9   ;;  %s865_s8 = sphi %s949_s8, %s1171_s8   ;;  %s861_s7 = sphi %s947_s7, %s1170_s7   ;;  %s857_s6 = sphi %s945_s6, %s1169_s6  }
   0x7   : > { %p24_p0 = scmp.ge.s32.totalorder %s23_s17, 2  ;;  %s26_s18 = sadd.s32 1, %s889_s14 }
   0x8   : > { %s35_s19 = sadd.s32 1, %s873_s10  ;;  %p42_p1 = scmp.ne.s32.totalorder %s873_s10, %s869_s9 }
   0x9   : > { %s1179_s17 = smov (%p24_p0, %s23_s17), 0  ;;  %s1181_s18 = smov (!%p24_p0, %s26_s18), %s889_s14 }
   0xa   : > { %s31_s20 = ssub.s32 %s885_s13, %s1179_s17  ;;  %p43_p2 = scmp.eq.s32.totalorder %s893_s15, 0 }
   0xb   : > { %p28_p3 = scmp.ge.s32.totalorder %s1181_s18, 4  ;;  %p48_p4 = scmp.ne.s32.totalorder %s869_s9, %s865_s8 }
   0xc   : > { %p1006_p5 = por %p43_p2, %p42_p1  ;;  %p49_p6 = scmp.eq.s32.totalorder %s535_s16, 0 }
   0xd   : > { %s1183_s18 = smov (%p28_p3, %s1181_s18), 0  ;;  %s61_s23 = sadd.s32 1, %s861_s7 }
   0xe   : > { %p1012_p7 = por %p49_p6, %p48_p4  ;;  %s30_s24 = ssub.s32 %s889_s14, %s1183_s18 }
   0xf   : > { %p71_p8 = scmp.ne.s32.totalorder %s861_s7, %s857_s6  ;;  %s32_s25 = sor.u32 %s31_s20, %s30_s24 }
  0x10   : > { %p59_p9 = scmp.eq.s32.totalorder %s30_s24, 0  ;;  %p33_p10 = scmp.eq.s32.totalorder %s32_s25, 0 }
  0x11   : > { %p72_p11 = scmp.eq.s32.totalorder %s535_s16, 7  ;;  %p538_p13 = scmp.ge.s32.totalorder %s893_s15, 8 }
  0x12   : > { %s1022_s26 = scalar_select %p59_p9, %s861_s7, %s61_s23  }
  0x13   : > { %s1025_s27 = scalar_select %p33_p10, %s873_s10, %s35_s19  }
  0x14   : > { %p1027_p12 = por %p72_p11, %p71_p8  ;;  %94 = sbr.rel (%p538_p13) target bundleno = 64 (0x40), region = 16 }
  0x1b   : > { %97 = sbr.rel (!%p1006_p5) target bundleno = 64 (0x40), region = 20  ;;  %s98_s29 = sand.u32 (%p1006_p5), 1, %s873_s10  }
  0x1c   : > { %s540_s30 = sshll.u32 (%p1006_p5), %s889_s14, 1  ;;  %s539_s2 = sshll.u32 (%p1006_p5), %s98_s29, 4 }
  0x1d   : > { %s104_s3 = ssub.s32 (%p1006_p5), 7, %s540_s30  ;;  %s1039_s8 = scalar_lea.sflag (%p1006_p5), [#allocation5], %s98_s29 }
  0x1e   : > { %p105_p0 = scmp.lt.s32.totalorder (%p1006_p5), %s104_s3, 2  ;;  %s102_s16 = scalar_lea.vmem (%p1006_p5), [#allocation4], %s539_s2 }
  0x22   : > { %s1185_s3 = smov (!%p105_p0, %s104_s3), 2 }
  0x23   : > { %s1036_s4 = sshll.u32 %s1185_s3, 7 }
  0x24   : > { %s109_s5 = ssub.s32 256, %s1036_s4 }
  0x25   : > { %110 = vsyncadd %s1039_s8, %s109_s5  ;;  %p542_p1 = scmp.ne.s32.totalorder %s1036_s4, 0  ;;  %s571_s19 = sshll.u32 %s889_s14, 2 }
  0x26   : > { %s113_s20 = sadd.s32 %s885_s13, %s571_s19  ;;  %s117_s21 = sshll.u32 %s102_s16, 4  ;;  %s1045_s21 = int_to_ptr.vmem [resolvable:$true] %s117_s21 }
  0x27   : > { %s544_s23 = sshll.u32 %s113_s20, 7  ;;  %s755_s5 = scalar_lea.hbm %s1164_s0, 1792 }
  0x28   : > { %s1050_s29 = scalar_lea.hbm %s1164_s0, %s544_s23 }
  0x29   : > { %s751_s30 = scalar_lea.hbm %s1050_s29, %s1036_s4  ;;  %p756_p5 = scmp.lt.u32.totalorder %s1050_s29, %s1164_s0 }
  0x2a   : > { %p752_p2 = scmp.ne.s32.totalorder %s1050_s29, %s751_s30  ;;  %p757_p6 = scmp.lt.u32.totalorder %s755_s5, %s751_s30 }
  0x2b   : > { %p759_p9 = scmp.lt.u32.totalorder %s751_s30, %s1050_s29 }
  0x2c   : > { %p753_p3 = pnand %p752_p2, %p542_p1  ;;  %p758_p8 = por %p757_p6, %p756_p5 }
  0x2e   : > { %p754_p4 = pneg %p753_p3  ;;  %p760_p10 = por %p759_p9, %p758_p8 }
  0x30   : > { %p761_p11 = pnand %p760_p10, %p754_p4 }
  0x32   : > { %764 = shalt.err (!%p761_p11)
}
  0x33   : > { %s765_s20 = scalar_lea.vmem %s1045_s21, %s1036_s4  ;;  %s927_s23 = smov [#allocation4]  }
  0x34   : > { %p766_p13 = scmp.ne.s32.totalorder %s1045_s21, %s765_s20  ;;  %s769_s24 = sshll.u32 %s927_s23, 4  ;;  %s770_s24 = int_to_ptr.vmem [resolvable:$false] %s769_s24 }
  0x35   : > { %s771_s25 = scalar_lea.vmem %s770_s24, 512  ;;  %p772_p3 = scmp.lt.s32.totalorder %s1045_s21, %s770_s24 }
  0x36   : > { %p767_p0 = pnand %p766_p13, %p542_p1  ;;  %p773_p5 = scmp.lt.s32.totalorder %s771_s25, %s765_s20 }
  0x38   : > { %p768_p2 = pneg %p767_p0  ;;  %p774_p6 = por %p773_p5, %p772_p3 }
  0x3a   : > { %p775_p8 = pnand %p774_p6, %p768_p2 }
  0x3c   : > { %778 = shalt.err (!%p775_p8)
}
  0x3d   : > { %s928_s30 = smov 256   ;;  %s929_s2 = smov 128  }
  0x3e   : > { %s930_s3 = smov 8  }
  0x3f   : > { %123 = dma.hbm_to_vmem [thread:$0]  (%p542_p1), %s1050_s29, %s1036_s4, %s1045_s21, %s1039_s8, %s928_s30, %s929_s2, %s930_s3  }
  0x40 PF: > { %p547_p4 = scmp.ge.s32.totalorder %s893_s15, 1  ;;  %p125_p9 = scmp.lt.s32.totalorder %s893_s15, 9 }
  0x42   : > { %p126_p10 = pnand %p547_p4, %p125_p9 }
  0x43   : > { %s131_s5 = sand.u32 (!%p126_p10), 1, %s869_s9  }
  0x44   : > { %129 = sbr.rel (%p126_p10) target bundleno = 1044 (0x414), region = 24  ;;  %s548_s16 = sshll.u32 (!%p126_p10), %s131_s5, 4 }
  0x45   : > { %s132_s19 = scalar_lea.sflag (!%p126_p10), [#allocation5], %s131_s5  ;;  %s135_s20 = scalar_lea.vmem (!%p126_p10), [#allocation4], %s548_s16 }
  0x4b   : > { %852 = dma.done.wait (%p1012_p7), %s132_s19, 256  }
  0x4c   : > { %854 = vsyncadd (%p1012_p7), %s132_s19, 4294967040  ;;  %s150_s4 = sand.u32 1, %s857_s6   ;;  %p550_p1 = scmp.ne.s32.totalorder %s877_s11, 0 }
  0x4d   : > { %s549_s8 = sshll.u32 %s150_s4, 4  ;;  %vm167_vm0 = vcmask (!%p550_p1), 7168   ;;  %v931_v0 = vmov (!%p550_p1), -inf   ;;  %v932_v1 = vmov (!%p550_p1), 0.0  }
  0x4e   : > { %s1085_s21 = scalar_lea.vmem [#allocation6], %s549_s8   ;;  %166 = sbr.rel (%p550_p1) target bundleno = 85 (0x55), region = 32  ;;  %168 = vst.msk [vmem:[#allocation2] sm:$0xff] (!%p550_p1), %vm167_vm0, %v931_v0  ;;  %169 = vst.msk [vmem:[#allocation2 + $0x8] sm:$0xff] (!%p550_p1), %vm167_vm0, %v931_v0 }
  0x4f   : > { %170 = vst.msk [vmem:[#allocation3] sm:$0xff] (!%p550_p1), %vm167_vm0, %v932_v1  ;;  %171 = vst.msk [vmem:[#allocation3 + $0x8] sm:$0xff] (!%p550_p1), %vm167_vm0, %v932_v1 }
  0x55 PF: > { %v172_v2 = vld [vmem:[%s135_s20] sm:$0xff]  ;;  %v173_v3 = vld [vmem:[%s135_s20 + $0x8] sm:$0xff]  ;;  %p551_p7 = scmp.eq.s32.totalorder %s877_s11, 1 }
  0x56   : > { %180 = vmax.xlane.f32.xlu0 (!%p551_p7), %v172_v2  ;;  %v933_v4 = vmov (!%p551_p7), 0   ;;  %v178_v5 = vld [vmem:[#allocation2] sm:$0xff] (!%p551_p7)  ;;  %vm218_vm1 = vcmask (!%p551_p7), 7168   ;;  %v179_v8 = vld [vmem:[#allocation2 + $0x8] sm:$0xff] (!%p551_p7)  ;;  %v192_v24 = vld [vmem:[#allocation3] sm:$0xff] (!%p551_p7) }
  0x57   : > { %177 = sbr.rel (%p551_p7) target bundleno = 522 (0x20a), region = 36  ;;  %727 = vset.pattern.permute.xlu1 (!%p551_p7), %v933_v4  ;;  %728 = vset.pattern.permute.xlu0 (!%p551_p7), %v933_v4  ;;  %v193_v28 = vld [vmem:[#allocation3 + $0x8] sm:$0xff] (!%p551_p7) }
  0x5a   : > { %182 = vmax.xlane.f32.xlu0 (!%p551_p7), %v173_v3 }
  0xe3   : > { %v181_v6 = vpop.xlane.xlu0 %180 }
  0xe4   : > { %v184_v7 = vmax.f32 %v178_v5, %v181_v6 }
  0xe6   : > { %v186_v9 = vsub.f32 %v178_v5, %v184_v7  ;;  %221 = vst.msk [vmem:[#allocation2] sm:$0xff] %vm218_vm1, %v184_v7  ;;  %198 = vperm.xlu1 %727, %v184_v7  }
  0xe7   : > { %v183_v10 = vpop.xlane.xlu0 %182 }
  0xe8   : > { %v185_v11 = vmax.f32 %v179_v8, %v183_v10  ;;  %v188_v21 = vmul.f32 1.442695, %v186_v9 }
  0xea   : > { %v187_v12 = vsub.f32 %v179_v8, %v185_v11  ;;  %222 = vst.msk [vmem:[#allocation2 + $0x8] sm:$0xff] %vm218_vm1, %v185_v11  ;;  %203 = vperm.xlu1 %727, %v185_v11  }
  0xec   : > { %v190_v22 = vmul.f32 1.442695, %v187_v12 }
 0x165   : > { %v199_v13 = vpop.permute.xlu1 %198 }
 0x166   : > { %v206_v14 = vsub.f32 %v172_v2, %v199_v13 }
 0x168   : > { %v208_v15 = vmul.f32 1.442695, %v206_v14 }
 0x169   : > { %v204_v16 = vpop.permute.xlu1 %203 }
 0x16a   : > { %729 = vpow2.f32 %v208_v15  ;;  %v207_v17 = vsub.f32 %v173_v3, %v204_v16 }
 0x16c   : > { %v210_v18 = vmul.f32 1.442695, %v207_v17 }
 0x16e   : > { %731 = vpow2.f32 %v210_v18 }
 0x16f   : > { %733 = vpow2.f32 %v188_v21 }
 0x170   : > { %735 = vpow2.f32 %v190_v22 }
 0x174   : > { %v730_v19 = vpop.eup %729 }
 0x175   : > { %212 = vadd.xlane.f32.xlu0 %v730_v19 }
 0x178   : > { %v732_v20 = vpop.eup %731 }
 0x179   : > { %214 = vadd.xlane.f32.xlu1 %v732_v20  ;;  %v734_v23 = vpop.eup %733 }
 0x17a   : > { %v194_v25 = vmul.f32 %v734_v23, %v192_v24  ;;  %v736_v26 = vpop.eup %735 }
 0x17b   : > { %v195_v30 = vmul.f32 %v736_v26, %v193_v28 }
 0x202   : > { %v213_v27 = vpop.xlane.xlu0 %212 }
 0x203   : > { %v216_v29 = vadd.f32 %v213_v27, %v194_v25 }
 0x205   : > { %219 = vst.msk [vmem:[#allocation3] sm:$0xff] %vm218_vm1, %v216_v29 }
 0x206   : > { %v215_v31 = vpop.xlane.xlu1 %214 }
 0x207   : > { %v217_v32 = vadd.f32 %v215_v31, %v195_v30 }
 0x209   : > { %220 = vst.msk [vmem:[#allocation3 + $0x8] sm:$0xff] %vm218_vm1, %v217_v32 }
 0x20a PF: > { %p552_p11 = scmp.ne.s32.totalorder %s877_s11, 1 }
 0x20b   : > { %v227_v33 = vlaneseq (!%p552_p11)  ;;  %s553_s6 = sshll.u32 (!%p552_p11), %s877_s11, 7  ;;  %v934_v38 = vmov (!%p552_p11), 0   ;;  %v235_v39 = vld [vmem:[#allocation2] sm:$0xff] (!%p552_p11)  ;;  %vm275_vm3 = vcmask (!%p552_p11), 7168   ;;  %v236_v42 = vld [vmem:[#allocation2 + $0x8] sm:$0xff] (!%p552_p11) }
 0x20c   : > { %226 = sbr.rel (%p552_p11) target bundleno = 988 (0x3dc), region = 40  ;;  %s230_s22 = ssub.s32 (!%p552_p11), 200, %s553_s6  ;;  %737 = vset.pattern.permute.xlu1 (!%p552_p11), %v934_v38  ;;  %738 = vset.pattern.permute.xlu0 (!%p552_p11), %v934_v38  ;;  %v249_v58 = vld [vmem:[#allocation3] sm:$0xff] (!%p552_p11) }
 0x20d   : > { %v228_v34 = vand.u32 (!%p552_p11), 127, %v227_v33  ;;  %v231_v35 = vstv (!%p552_p11), %s230_s22 }
 0x20f   : > { %vm232_vm2 = vcmp.lt.s32.totalorder (!%p552_p11), %v228_v34, %v231_v35 }
 0x210   : > { %v233_v36 = vsel (!%p552_p11), %vm232_vm2, %v172_v2, -1e+30  ;;  %v234_v37 = vsel (!%p552_p11), %vm232_vm2, %v173_v3, -1e+30  ;;  %v250_v62 = vld [vmem:[#allocation3 + $0x8] sm:$0xff] (!%p552_p11) }
 0x211   : > { %237 = vmax.xlane.f32.xlu0 (!%p552_p11), %v233_v36 }
 0x215   : > { %239 = vmax.xlane.f32.xlu0 %v234_v37 }
 0x29e   : > { %v238_v40 = vpop.xlane.xlu0 %237 }
 0x29f   : > { %v241_v41 = vmax.f32 %v235_v39, %v238_v40 }
 0x2a1   : > { %v243_v43 = vsub.f32 %v235_v39, %v241_v41  ;;  %278 = vst.msk [vmem:[#allocation2] sm:$0xff] %vm275_vm3, %v241_v41  ;;  %255 = vperm.xlu1 %737, %v241_v41  }
 0x2a2   : > { %v240_v44 = vpop.xlane.xlu0 %239 }
 0x2a3   : > { %v242_v45 = vmax.f32 %v236_v42, %v240_v44  ;;  %v245_v55 = vmul.f32 1.442695, %v243_v43 }
 0x2a5   : > { %v244_v46 = vsub.f32 %v236_v42, %v242_v45  ;;  %279 = vst.msk [vmem:[#allocation2 + $0x8] sm:$0xff] %vm275_vm3, %v242_v45  ;;  %260 = vperm.xlu1 %737, %v242_v45  }
 0x2a7   : > { %v247_v56 = vmul.f32 1.442695, %v244_v46 }
 0x2a8   : > { %v280_v7 = vld [vmem:[#allocation2] sm:$0xff] }
 0x2ac   : > { %v281_v11 = vld [vmem:[#allocation2 + $0x8] sm:$0xff] }
 0x320   : > { %v256_v47 = vpop.permute.xlu1 %255 }
 0x321   : > { %v263_v48 = vsub.f32 %v233_v36, %v256_v47 }
 0x323   : > { %v265_v49 = vmul.f32 1.442695, %v263_v48 }
 0x324   : > { %v261_v50 = vpop.permute.xlu1 %260 }
 0x325   : > { %739 = vpow2.f32 %v265_v49  ;;  %v264_v51 = vsub.f32 %v234_v37, %v261_v50 }
 0x327   : > { %v267_v52 = vmul.f32 1.442695, %v264_v51 }
 0x329   : > { %741 = vpow2.f32 %v267_v52 }
 0x32a   : > { %743 = vpow2.f32 %v245_v55 }
 0x32b   : > { %745 = vpow2.f32 %v247_v56 }
 0x32f   : > { %v740_v53 = vpop.eup %739 }
 0x330   : > { %269 = vadd.xlane.f32.xlu0 %v740_v53 }
 0x333   : > { %v742_v54 = vpop.eup %741 }
 0x334   : > { %271 = vadd.xlane.f32.xlu1 %v742_v54  ;;  %v744_v57 = vpop.eup %743 }
 0x335   : > { %v251_v59 = vmul.f32 %v744_v57, %v249_v58  ;;  %v746_v60 = vpop.eup %745 }
 0x336   : > { %v252_v0 = vmul.f32 %v746_v60, %v250_v62 }
 0x3bd   : > { %v270_v61 = vpop.xlane.xlu0 %269 }
 0x3be   : > { %v273_v63 = vadd.f32 %v270_v61, %v251_v59 }
 0x3c0   : > { %276 = vst.msk [vmem:[#allocation3] sm:$0xff] %vm275_vm3, %v273_v63 }
 0x3c1   : > { %v272_v1 = vpop.xlane.xlu1 %271 }
 0x3c2   : > { %v274_v2 = vadd.f32 %v272_v1, %v252_v0 }
 0x3c4   : > { %277 = vst.msk [vmem:[#allocation3 + $0x8] sm:$0xff] %vm275_vm3, %v274_v2 }
 0x3c7   : > { %v282_v3 = vld [vmem:[#allocation3] sm:$0xff] }
 0x3c8   : > { %747 = vlog2.f32 %v282_v3 }
 0x3cb   : > { %v283_v4 = vld [vmem:[#allocation3 + $0x8] sm:$0xff] }
 0x3cc   : > { %749 = vlog2.f32 %v283_v4 }
 0x3d2   : > { %v748_v5 = vpop.eup %747 }
 0x3d3   : > { %v285_v6 = vmul.f32 0.6931472, %v748_v5 }
 0x3d5   : > { %v288_v8 = vadd.f32 %v285_v6, %v280_v7 }
 0x3d6   : > { %v750_v9 = vpop.eup %749 }
 0x3d7   : > { %290 = vst.msk [vmem:[%s1085_s21] sm:$0xff] %vm275_vm3, %v288_v8  ;;  %v287_v10 = vmul.f32 0.6931472, %v750_v9 }
 0x3d9   : > { %v289_v12 = vadd.f32 %v287_v10, %v281_v11 }
 0x3db   : > { %291 = vst.msk [vmem:[%s1085_s21 + $0x8] sm:$0xff] %vm275_vm3, %v289_v12 }
 0x3dc PF: > { %298 = sbr.rel (!%p1027_p12) target bundleno = 1044 (0x414), region = 44  ;;  %s555_s11 = sshll.u32 (%p1027_p12), %s881_s12, 1 }
 0x3dd   : > { %s572_s29 = sshll.u32 (%p1027_p12), %s881_s12, 4  ;;  %s300_s23 = ssub.s32 (%p1027_p12), 7, %s555_s11 }
 0x3de   : > { %s1110_s30 = scalar_lea.vmem (%p1027_p12), %s1165_s1, %s572_s29   ;;  %p301_p13 = scmp.lt.s32.totalorder (%p1027_p12), %s300_s23, 2 }
 0x3e3   : > { %s1187_s23 = smov (!%p301_p13, %s300_s23), 2 }
 0x3e4   : > { %s556_s2 = sshll.u32 %s1187_s23, 7 }
 0x3e5   : > { %p559_p0 = scmp.eq.s32.totalorder %s556_s2, 0 }
 0x3e6   : > { %s1116_s28 = sshrl.u32 (!%p559_p0), %s1187_s23, 1 }
 0x3e7   : > { %309 = sbr.rel (%p559_p0) target bundleno = 1044 (0x414), region = 48  ;;  %p560_p12 = scmp.le.s32.totalorder (!%p559_p0), %s1116_s28, 0 }
 0x3ee   : > { %477 = sbr.rel (%p560_p12) target bundleno = 1023 (0x3ff), region = 130  ;;  %s895_s12 = smov (!%p560_p12), %s1110_s30  }
 0x3ef   : > { %s899_s3 = smov (!%p560_p12), %s1085_s21   ;;  %s903_s5 = smov (!%p560_p12), 0  }
 0x3f0   : > { %s907_s16 = smov (!%p560_p12), 0  }
 0x3f5 LB: >> { %v373_v13 = vld [vmem:[%s901_s3] sm:$0xff]  ;;  %v375_v14 = vld [vmem:[%s901_s3 + $0x8] sm:$0xff]  ;;  %s377_s19 = sadd.s32 1, %s905_s5  ;;  %s367_s16 = sadd.s32 1, %s909_s16   ;;  %s909_s16 = sphi %s907_s16, %s367_s16   ;;  %s905_s5 = sphi %s903_s5, %s904_s5   ;;  %s901_s3 = sphi %s899_s3, %s382_s3   ;;  %s897_s12 = sphi %s895_s12, %s383_s12  }
 0x3f6   : >> { %374 = vst [vmem:[%s897_s12] sm:$0xff] %v373_v13  ;;  %376 = vst [vmem:[%s897_s12 + $0x8] sm:$0xff] %v375_v14  ;;  %p378_p2 = scmp.ge.s32.totalorder %s377_s19, %s1116_s28  ;;  %p366_p3 = scmp.ge.s32.totalorder %s367_s16, %s1116_s28 }
 0x3f8   : >> { %s1189_s19 = smov (%p378_p2, %s377_s19), 0  ;;  %369 = sbr.rel (!%p366_p3) target bundleno = 1013 (0x3f5), region = 136 }
 0x3f9   : >> { %s561_s20 = sshll.u32 %s1189_s19, 4  ;;  %s904_s5 = smov %s1189_s19  }
 0x3fa   : >> { %s382_s3 = scalar_lea.vmem %s1085_s21, %s561_s20 [#allocation6]   ;;  %s383_s12 = scalar_lea.vmem %s1110_s30, %s561_s20  }
 0x3ff PF: > { %s1126_s4 = sand.u32 1, %s1187_s23   ;;  %s573_s8 = sshll.u32 %s1116_s28, 4 }
 0x400   : > { %s388_s6 = scalar_lea.vmem %s1085_s21, %s573_s8 [#allocation6]   ;;  %s390_s22 = scalar_lea.vmem %s1110_s30, %s573_s8  }
 0x401   : > { %p566_p5 = scmp.le.s32.totalorder %s1126_s4, 0 }
 0x402   : > { %s911_s11 = smov (!%p566_p5), %s390_s22   ;;  %s915_s29 = smov (!%p566_p5), %s388_s6  }
 0x403   : > { %491 = sbr.rel (%p566_p5) target bundleno = 1044 (0x414), region = 141  ;;  %s919_s24 = smov (!%p566_p5), 0  }
 0x404   : > { %s923_s25 = smov (!%p566_p5), 0  }
 0x40a LB: >> { %v400_v15 = vld [vmem:[%s917_s29] sm:$0xff]  ;;  %s402_s23 = sadd.s32 1, %s921_s24  ;;  %s394_s25 = sadd.s32 1, %s925_s25   ;;  %s925_s25 = sphi %s923_s25, %s394_s25   ;;  %s921_s24 = sphi %s919_s24, %s920_s24   ;;  %s917_s29 = sphi %s915_s29, %s407_s29   ;;  %s913_s11 = sphi %s911_s11, %s408_s11  }
 0x40b   : >> { %401 = vst [vmem:[%s913_s11] sm:$0xff] %v400_v15  ;;  %p403_p6 = scmp.ge.s32.totalorder %s402_s23, %s1126_s4  ;;  %p393_p8 = scmp.ge.s32.totalorder %s394_s25, %s1126_s4 }
 0x40d   : >> { %s1191_s23 = smov (%p403_p6, %s402_s23), 0  ;;  %396 = sbr.rel (!%p393_p8) target bundleno = 1034 (0x40a), region = 147 }
 0x40e   : >> { %s567_s21 = sshll.u32 %s1191_s23, 3  ;;  %s920_s24 = smov %s1191_s23  }
 0x40f   : >> { %s407_s29 = scalar_lea.vmem %s388_s6, %s567_s21 [#allocation6]   ;;  %s408_s11 = scalar_lea.vmem %s390_s22, %s567_s21  }
 0x414 PF: > { %s14_s15 = sadd.s32 1, %s893_s15   ;;  %s1169_s6 = smov %s861_s7 }
 0x415   : > { %p11_p4 = scmp.ge.s32.totalorder %s14_s15, 10   ;;  %s1170_s7 = smov %s1022_s26 }
 0x416   : > { %s1171_s8 = smov %s869_s9  ;;  %s1172_s9 = smov %s873_s10 }
 0x417   : > { %s1173_s10 = smov %s1025_s27  ;;  %s1174_s11 = smov %s885_s13 }
 0x418   : > { %s1175_s12 = smov %s889_s14  ;;  %s1176_s13 = smov %s1179_s17 }
 0x419   : > { %s1177_s14 = smov %s1183_s18  ;;  %13 = sbr.rel (!%p11_p4) target bundleno = 6 (0x6), region = 158 }
 0x420   :  { %424 = vsyncpa [#allocation5], 1 }
 0x421   :  { %426 = vsyncpa [#allocation5 + $0x1], 1 }

</bundles_post_ra>
